<compile_context>
chip_gen: v5e
topology: v5e:2x2
jax: 0.10.0
libtpu: 0.0.40
codegen_flags: <defaults>
</compile_context>

<pallas_src>
from functools import partial

import jax
import jax.numpy as jnp
from jax.experimental import pallas as pl
from jax.experimental.pallas import tpu as pltpu


def _cdiv(a: int, b: int) -> int:
    return (a + b - 1) // b


def _round_up(a: int, b: int) -> int:
    return _cdiv(a, b) * b


def _vmem_capacity_bytes() -> int:
    try:
        return int(pltpu.get_tpu_info().vmem_capacity_bytes)
    except Exception:
        return 64 << 20  # conservative default (holds on v5e/v6e/v7x)


# ------------------------------ Pallas kernel ------------------------------ #
def _medusa_kernel(x_ref, w_in_ref, w_lin_ref, w_post_ref, hs_ref, nhs_ref, *, eps):
    # x_ref:      (tm, H)  input hidden-state row tile (pipelined)
    # w_in_ref:   (1, H)   input_layernorm weight   (VMEM-resident, single copy)
    # w_lin_ref:  (H, H)   linear weight, transposed to (in, out), bf16 storage
    # w_post_ref: (1, H)   post_layernorm weight    (VMEM-resident, single copy)
    # hs_ref:     (tm, H)  residual-added hidden states (output 0)
    # nhs_ref:    (tm, H)  post-norm hidden states      (output 1)
    x = x_ref[...].astype(jnp.float32)                               # (tm, H)

    # --- input RMSNorm in f32 (matches LlamaRMSNorm numerics) ---
    var1 = jnp.mean(x * x, axis=-1, keepdims=True)                   # (tm, 1)
    ln1 = (x * jax.lax.rsqrt(var1 + eps)) * w_in_ref[...].astype(jnp.float32)

    # --- Linear (no bias) on the MXU in the weight's dtype (bf16 by default);
    #     f32 accumulation.  No per-step cast of the (H, H) weight. ---
    y = jnp.dot(ln1.astype(w_lin_ref.dtype), w_lin_ref[...],
                preferred_element_type=jnp.float32)                  # (tm, H)

    # --- residual add ---
    hs = x + y
    hs_ref[...] = hs.astype(hs_ref.dtype)

    # --- post RMSNorm in f32 ---
    var2 = jnp.mean(hs * hs, axis=-1, keepdims=True)
    nhs = (hs * jax.lax.rsqrt(var2 + eps)) * w_post_ref[...].astype(jnp.float32)
    nhs_ref[...] = nhs.astype(nhs_ref.dtype)


# ------------------------------ wrapper / module ---------------------------- #
def medusa_forward(hidden_states, w_input_ln, w_linear_t, w_post_ln,
                   *, eps=1e-6, block_rows=None, alias_residual=False):
    """Fused MedusaModel forward.

    w_linear_t is nn.Linear.weight transposed to (in, out), ideally bf16.
    Returns (hidden_states + linear(rmsnorm(hidden_states)), rmsnorm(of that)).
    """
    H = hidden_states.shape[-1]
    lead = hidden_states.shape[:-1]
    x2d = hidden_states.reshape(-1, H)
    M = x2d.shape[0]

    vmem_cap = _vmem_capacity_bytes()
    # Generation-aware defaults: big tiles on 128 MiB parts, smaller on v7x.
    if block_rows is None:
        block_rows = 512 if vmem_cap >= (96 << 20) else 256
    vmem_limit = min(100 << 20, int(vmem_cap * 0.85))

    # Pick tm so the grid splits M nearly evenly (waste < 8 rows per block);
    # the ragged last block is handled by Pallas (no wrapper-side padding).
    n_target = max(1, _cdiv(M, block_rows))
    tm = min(_round_up(_cdiv(M, n_target), 8), _round_up(M, 8))
    grid = (_cdiv(M, tm),)

    out_dtype = hidden_states.dtype
    itemsize = jnp.dtype(out_dtype).itemsize
    cost = pl.CostEstimate(
        flops=2 * M * H * H + 8 * M * H,
        transcendentals=2 * M,
        bytes_accessed=(M * H * itemsize                      # x read
                        + H * H * jnp.dtype(w_linear_t.dtype).itemsize
                        + 2 * H * 4                           # LN weights
                        + 2 * M * H * itemsize),              # two outputs
    )

    extra = {}
    if alias_residual:
        # Only beneficial when the caller donates hidden_states; each block is
        # read before its aliased writeback, so it is safe under pipelining.
        extra["input_output_aliases"] = {0: 0}

    hs, nhs = pl.pallas_call(
        partial(_medusa_kernel, eps=eps),
        out_shape=(jax.ShapeDtypeStruct((M, H), out_dtype),
                   jax.ShapeDtypeStruct((M, H), out_dtype)),
        grid=grid,
        in_specs=[
            pl.BlockSpec((tm, H), lambda i: (i, 0)),                     # x rows, pipelined
            pl.BlockSpec(memory_space=pltpu.MemorySpace.VMEM),           # input LN weight
            pl.BlockSpec(memory_space=pltpu.MemorySpace.VMEM),           # linear weight^T
            pl.BlockSpec(memory_space=pltpu.MemorySpace.VMEM),           # post LN weight
        ],
        out_specs=(pl.BlockSpec((tm, H), lambda i: (i, 0)),
                   pl.BlockSpec((tm, H), lambda i: (i, 0))),
        compiler_params=pltpu.CompilerParams(
            dimension_semantics=("parallel",),
            vmem_limit_bytes=vmem_limit),
        cost_estimate=cost,
        **extra,
    )(x2d, w_input_ln.reshape(1, H), w_linear_t, w_post_ln.reshape(1, H))

    return hs.reshape(*lead, H), nhs.reshape(*lead, H)


class MedusaModel:
    """JAX/Pallas port of the PyTorch MedusaModel (Linear + two LlamaRMSNorms)."""

    def __init__(self, hidden_size, rms_norm_eps=1e-6,
                 w_linear=None, w_input_ln=None, w_post_ln=None,
                 block_rows=None, weight_dtype=jnp.bfloat16):
        self.hidden_size = hidden_size
        self.eps = float(rms_norm_eps)
        self.block_rows = block_rows
        if w_linear is None:
            w_linear = jnp.eye(hidden_size, dtype=jnp.float32)
        if w_input_ln is None:
            w_input_ln = jnp.ones((hidden_size,), jnp.float32)
        if w_post_ln is None:
            w_post_ln = jnp.ones((hidden_size,), jnp.float32)
        # nn.Linear stores weight as (out, in) and computes x @ W^T; pre-transpose
        # once and store in bf16 so the kernel feeds the MXU directly (no
        # per-step f32 upcast of the full (H, H) weight).
        self.w_linear_t = jnp.asarray(w_linear).T.astype(weight_dtype)
        # LN weights stay f32 so the in-kernel cast is a no-op.
        self.w_input_ln = jnp.asarray(w_input_ln).astype(jnp.float32)
        self.w_post_ln = jnp.asarray(w_post_ln).astype(jnp.float32)

    def __call__(self, hidden_states):
        return medusa_forward(hidden_states, self.w_input_ln, self.w_linear_t,
                              self.w_post_ln, eps=self.eps,
                              block_rows=self.block_rows)


# ---------------------------------- main ----------------------------------- #
if __name__ == "__main__":
    key = jax.random.PRNGKey(0)
    batch, seq, hidden = 2, 8, 128
    eps = 1e-6

    k1, k2, k3, k4 = jax.random.split(key, 4)
    x = jax.random.normal(k1, (batch, seq, hidden), dtype=jnp.float32)
    w_linear = 0.02 * jax.random.normal(k2, (hidden, hidden), dtype=jnp.float32)  # (out, in)
    w_input_ln = 1.0 + 0.1 * jax.random.normal(k3, (hidden,), dtype=jnp.float32)
    w_post_ln = 1.0 + 0.1 * jax.random.normal(k4, (hidden,), dtype=jnp.float32)

    model = MedusaModel(hidden_size=hidden, rms_norm_eps=eps,
                        w_linear=w_linear, w_input_ln=w_input_ln,
                        w_post_ln=w_post_ln)

    hs, nhs = model(x)
    hs = jax.block_until_ready(hs)
    nhs = jax.block_until_ready(nhs)

    # ------------------------- pure-JAX reference --------------------------- #
    def rmsnorm_ref(h, w, eps):
        hf = h.astype(jnp.float32)
        var = jnp.mean(hf * hf, axis=-1, keepdims=True)
        return (w * (hf * jax.lax.rsqrt(var + eps)).astype(h.dtype)).astype(h.dtype)

    ln1_ref = rmsnorm_ref(x, w_input_ln, eps)
    lin_ref = jnp.einsum("bsh,oh->bso", ln1_ref, w_linear)
    hs_ref = x + lin_ref
    nhs_ref = rmsnorm_ref(hs_ref, w_post_ln, eps)

    assert hs.shape == (batch, seq, hidden) and nhs.shape == (batch, seq, hidden)
    assert hs.dtype == x.dtype and nhs.dtype == x.dtype
    assert jnp.allclose(hs, hs_ref, atol=2e-2, rtol=2e-2), \
        f"hs mismatch, max err {jnp.max(jnp.abs(hs - hs_ref))}"
    assert jnp.allclose(nhs, nhs_ref, atol=2e-2, rtol=2e-2), \
        f"nhs mismatch, max err {jnp.max(jnp.abs(nhs - nhs_ref))}"

    print("KERNEL_OK")
</pallas_src>

<mosaic_0001>
module attributes {stable_mosaic.version = 11 : i64} {
  func.func @_medusa_kernel(%arg0: i32, %arg1: memref<16x128xf32, #tpu.memory_space<vmem>>, %arg2: memref<1x128xf32, #tpu.memory_space<vmem>>, %arg3: memref<128x128xbf16, #tpu.memory_space<vmem>>, %arg4: memref<1x128xf32, #tpu.memory_space<vmem>>, %arg5: memref<16x128xf32, #tpu.memory_space<vmem>>, %arg6: memref<16x128xf32, #tpu.memory_space<vmem>>) attributes {dimension_semantics = [#tpu.dimension_semantics<parallel>], iteration_bounds = array<i64: 1>, scalar_prefetch = 0 : i64, scratch_operands = 0 : i64, tpu.core_type = #tpu.core_type<tc>, window_params = [{transform_indices = @transform_0, window_bounds = array<i64: 16, 128>}, {pipeline_mode = #tpu.pipeline_mode<synchronous>, transform_indices = @transform_1, window_bounds = array<i64: 1, 128>}, {pipeline_mode = #tpu.pipeline_mode<synchronous>, transform_indices = @transform_2, window_bounds = array<i64: 128, 128>}, {pipeline_mode = #tpu.pipeline_mode<synchronous>, transform_indices = @transform_3, window_bounds = array<i64: 1, 128>}, {transform_indices = @transform_4, window_bounds = array<i64: 16, 128>}, {transform_indices = @transform_5, window_bounds = array<i64: 16, 128>}]} {
    %c0 = arith.constant 0 : index
    %c0_0 = arith.constant 0 : index
    %0 = vector.load %arg1[%c0, %c0_0] : memref<16x128xf32, #tpu.memory_space<vmem>>, vector<16x128xf32>
    %1 = arith.mulf %0, %0 : vector<16x128xf32>
    %cst = arith.constant dense<0.000000e+00> : vector<16xf32>
    %2 = vector.multi_reduction <add>, %1, %cst [1] : vector<16x128xf32> to vector<16xf32>
    %3 = vector.shape_cast %2 : vector<16xf32> to vector<16x1xf32>
    %cst_1 = arith.constant 1.280000e+02 : f32
    %4 = vector.broadcast %cst_1 : f32 to vector<16x1xf32>
    %5 = arith.divf %3, %4 : vector<16x1xf32>
    %cst_2 = arith.constant 9.99999997E-7 : f32
    %6 = vector.broadcast %cst_2 : f32 to vector<16x1xf32>
    %7 = arith.addf %5, %6 : vector<16x1xf32>
    %8 = math.rsqrt %7 : vector<16x1xf32>
    %9 = vector.broadcast %8 : vector<16x1xf32> to vector<16x128xf32>
    %10 = arith.mulf %0, %9 : vector<16x128xf32>
    %c0_3 = arith.constant 0 : index
    %c0_4 = arith.constant 0 : index
    %11 = vector.load %arg2[%c0_3, %c0_4] : memref<1x128xf32, #tpu.memory_space<vmem>>, vector<1x128xf32>
    %12 = vector.broadcast %11 : vector<1x128xf32> to vector<16x128xf32>
    %13 = arith.mulf %10, %12 : vector<16x128xf32>
    %14 = arith.truncf %13 : vector<16x128xf32> to vector<16x128xbf16>
    %c0_5 = arith.constant 0 : index
    %c0_6 = arith.constant 0 : index
    %15 = vector.load %arg3[%c0_5, %c0_6] : memref<128x128xbf16, #tpu.memory_space<vmem>>, vector<128x128xbf16>
    %cst_7 = arith.constant dense<0.000000e+00> : vector<16x128xf32>
    %16 = tpu.matmul %14, %15, %cst_7 {dimension_numbers = #tpu.dot_dimension_numbers<[1], [0], [0], [1], [0, 0, 1, 1], [], []>} : vector<16x128xbf16>, vector<128x128xbf16>, vector<16x128xf32> -> vector<16x128xf32>
    %17 = arith.addf %0, %16 : vector<16x128xf32>
    %c0_8 = arith.constant 0 : index
    %c0_9 = arith.constant 0 : index
    %18 = vector.load %arg5[%c0_8, %c0_9] : memref<16x128xf32, #tpu.memory_space<vmem>>, vector<16x128xf32>
    tpu.vector_store %arg5[%c0_8, %c0_9], %17 {strides = array<i32>} : memref<16x128xf32, #tpu.memory_space<vmem>>, vector<16x128xf32>,
    %19 = arith.mulf %17, %17 : vector<16x128xf32>
    %cst_10 = arith.constant dense<0.000000e+00> : vector<16xf32>
    %20 = vector.multi_reduction <add>, %19, %cst_10 [1] : vector<16x128xf32> to vector<16xf32>
    %21 = vector.shape_cast %20 : vector<16xf32> to vector<16x1xf32>
    %cst_11 = arith.constant 1.280000e+02 : f32
    %22 = vector.broadcast %cst_11 : f32 to vector<16x1xf32>
    %23 = arith.divf %21, %22 : vector<16x1xf32>
    %cst_12 = arith.constant 9.99999997E-7 : f32
    %24 = vector.broadcast %cst_12 : f32 to vector<16x1xf32>
    %25 = arith.addf %23, %24 : vector<16x1xf32>
    %26 = math.rsqrt %25 : vector<16x1xf32>
    %27 = vector.broadcast %26 : vector<16x1xf32> to vector<16x128xf32>
    %28 = arith.mulf %17, %27 : vector<16x128xf32>
    %c0_13 = arith.constant 0 : index
    %c0_14 = arith.constant 0 : index
    %29 = vector.load %arg4[%c0_13, %c0_14] : memref<1x128xf32, #tpu.memory_space<vmem>>, vector<1x128xf32>
    %30 = vector.broadcast %29 : vector<1x128xf32> to vector<16x128xf32>
    %31 = arith.mulf %28, %30 : vector<16x128xf32>
    %c0_15 = arith.constant 0 : index
    %c0_16 = arith.constant 0 : index
    %32 = vector.load %arg6[%c0_15, %c0_16] : memref<16x128xf32, #tpu.memory_space<vmem>>, vector<16x128xf32>
    tpu.vector_store %arg6[%c0_15, %c0_16], %31 {strides = array<i32>} : memref<16x128xf32, #tpu.memory_space<vmem>>, vector<16x128xf32>,
    return
  }
  func.func @transform_0(%arg0: i32) -> (i32, i32) {
    %c0_i32 = arith.constant 0 : i32
    %c0_i32_0 = arith.constant 0 : i32
    return %arg0, %c0_i32 : i32, i32
  }
  func.func @transform_1(%arg0: i32) -> (i32, i32) {
    %c0_i32 = arith.constant 0 : i32
    %c0_i32_0 = arith.constant 0 : i32
    %c0_i32_1 = arith.constant 0 : i32
    return %c0_i32, %c0_i32_0 : i32, i32
  }
  func.func @transform_2(%arg0: i32) -> (i32, i32) {
    %c0_i32 = arith.constant 0 : i32
    %c0_i32_0 = arith.constant 0 : i32
    %c0_i32_1 = arith.constant 0 : i32
    return %c0_i32, %c0_i32_0 : i32, i32
  }
  func.func @transform_3(%arg0: i32) -> (i32, i32) {
    %c0_i32 = arith.constant 0 : i32
    %c0_i32_0 = arith.constant 0 : i32
    %c0_i32_1 = arith.constant 0 : i32
    return %c0_i32, %c0_i32_0 : i32, i32
  }
  func.func @transform_4(%arg0: i32) -> (i32, i32) {
    %c0_i32 = arith.constant 0 : i32
    %c0_i32_0 = arith.constant 0 : i32
    return %arg0, %c0_i32 : i32, i32
  }
  func.func @transform_5(%arg0: i32) -> (i32, i32) {
    %c0_i32 = arith.constant 0 : i32
    %c0_i32_0 = arith.constant 0 : i32
    return %arg0, %c0_i32 : i32, i32
  }
}

</mosaic_0001>

<bundles_post_ra>
// kernel: tpu_custom_call.1
= control target key start
LH: loop header
LB: loop body
LE: loop exit
PB: predicated region body
PF: predicated region fallthrough
CT: control target
= control target key end

     0   :  { %11 = vsyncpa [#allocation3], 0  ;;  %s543_s0 = inlined_call_operand.hbm [shape: f32[16,128], index: 0, kind: input, shape index: {}]   ;;  %s544_s1 = inlined_call_operand.hbm [shape: f32[1,128], index: 1, kind: input, shape index: {}]   ;;  %s545_s2 = inlined_call_operand.hbm [shape: bf16[128,128], index: 2, kind: input, shape index: {}]   ;;  %s546_s3 = inlined_call_operand.vmem [shape: f32[1,128], index: 3, kind: input, shape index: {}]   ;;  %s547_s4 = inlined_call_operand.hbm [shape: f32[16,128], index: 4, kind: output, shape index: {0}]   ;;  %s548_s5 = inlined_call_operand.hbm [shape: f32[16,128], index: 5, kind: output, shape index: {1}]  }
   0x1   :  { %12 = vsyncpa [#allocation6], 0 }
   0x2   :  { %13 = vsyncpa [#allocation4], 0  ;;  %s33_s20 = sshll.u32 %s544_s1, 4  ;;  %s34_s20 = int_to_ptr.hbm [resolvable:$true] %s33_s20 }
   0x3   :  { %14 = vsyncpa [#allocation10], 0  ;;  %s464_s21 = smov [#allocation5]   ;;  %s19_s25 = sshll.u32 %s543_s0, 4  ;;  %s20_s25 = int_to_ptr.hbm [resolvable:$true] %s19_s25 }
   0x4   :  { %s35_s22 = sshll.u32 %s464_s21, 4  ;;  %s465_s26 = smov [#allocation2]   ;;  %s36_s22 = int_to_ptr.vmem [resolvable:$true] %s35_s22 }
   0x5   :  { %38 = dma.hbm_to_vmem [thread:$0]  %s34_s20, 16, %s36_s22, [#allocation6]  }
   0x6   :  { %s21_s27 = sshll.u32 %s465_s26, 4  ;;  %s466_s28 = smov 128   ;;  %s22_s27 = int_to_ptr.vmem [resolvable:$true] %s21_s27 }
   0x7   :  { %s467_s29 = smov 8   ;;  %s43_s6 = sshll.u32 %s545_s2, 4  ;;  %s44_s6 = int_to_ptr.hbm [resolvable:$true] %s43_s6 }
   0x8   :  { %27 = dma.hbm_to_vmem [thread:$0]  %s20_s25, 256, %s22_s27, [#allocation3], %s466_s28, %s466_s28, %s467_s29  }
   0x9   :  { %s468_s7 = smov [#allocation7]   ;;  %s469_s0 = smov 64  }
   0xa   :  { %s45_s8 = sshll.u32 %s468_s7, 4  ;;  %s470_s9 = smov 4   ;;  %s46_s8 = int_to_ptr.vmem [resolvable:$true] %s45_s8 }
   0xb   :  { %51 = dma.hbm_to_vmem [thread:$0]  %s44_s6, 1024, %s46_s8, [#allocation6], %s469_s0, %s469_s0, %s470_s9  }
   0xc   :  { %456 = dma.done.wait [#allocation3], 256  }
   0xd   :  { %457 = vsyncadd [#allocation3], 4294967040 }
   0xe   :  { %458 = dma.done.wait [#allocation6], 1040  }
   0xf   :  { %459 = vsyncadd [#allocation6], 4294966256  ;;  %v516_v0 = vld [vmem:[#allocation2] sm:$0xff]  ;;  %v520_v2 = vld [vmem:[#allocation2 + $0x8] sm:$0xff]  ;;  %v471_v5 = vmov 128.0   ;;  %s242_s11 = sshll.u32 %s547_s4, 4  ;;  %s243_s11 = int_to_ptr.hbm [resolvable:$true] %s242_s11 }
  0x10   :  { %v68_v1 = vmul.f32 %v516_v0, %v516_v0  ;;  %v69_v3 = vmul.f32 %v520_v2, %v520_v2  ;;  %v313_v4 = vld [vmem:[#allocation7 + $0x38] sm:$0xff]  ;;  %326 = vrcp.f32 %v471_v5  ;;  %v312_v6 = vld [vmem:[#allocation7 + $0x30] sm:$0xff]  ;;  %v311_v8 = vld [vmem:[#allocation7 + $0x28] sm:$0xff]  ;;  %s472_s12 = smov [#allocation8]   ;;  %s473_s15 = smov [#allocation9]  }
  0x11   :  { %178 = vmatpush.bf16.msra.mxu0 %v313_v4  ;;  %v310_v10 = vld [vmem:[#allocation7 + $0x20] sm:$0xff]  ;;  %v309_v12 = vld [vmem:[#allocation7 + $0x18] sm:$0xff]  ;;  %v308_v14 = vld [vmem:[#allocation7 + $0x10] sm:$0xff]  ;;  %s240_s13 = sshll.u32 %s472_s12, 4  ;;  %s253_s16 = sshll.u32 %s473_s15, 4  ;;  %s241_s13 = int_to_ptr.vmem [resolvable:$true] %s240_s13  ;;  %s254_s16 = int_to_ptr.vmem [resolvable:$true] %s253_s16 }
  0x12   :  { %70 = vadd.xlane.f32.xlu0 %v68_v1  ;;  %v307_v16 = vld [vmem:[#allocation7 + $0x8] sm:$0xff]  ;;  %v306_v18 = vld [vmem:[#allocation7] sm:$0xff]  ;;  %v324_v39 = vld [vmem:[#allocation5] ss:$0 sm:$0xff]  ;;  %s255_s19 = sshll.u32 %s548_s5, 4  ;;  %s256_s19 = int_to_ptr.hbm [resolvable:$true] %s255_s19 }
  0x13   :  { %v325_v1 = vld [vmem:[%s546_s3] ss:$0 sm:$0xff] }
  0x15   :  { %179 = vmatpush.bf16.msra.mxu0 %v312_v6 }
  0x16   :  { %v327_v7 = vpop.eup %326 }
  0x17   :  { %v75_v9 = vmul.f32 128.0, %v327_v7  ;;  %vm79_vm0 = vweird.f32 %v327_v7 }
  0x19   :  { %180 = vmatpush.bf16.msra.mxu0 %v311_v8  ;;  %v76_v11 = vsub.f32 1.0, %v75_v9 }
  0x1a   :  { %72 = vadd.xlane.f32.xlu0 %v69_v3 }
  0x1b   :  { %v77_v13 = vmul.f32 %v327_v7, %v76_v11 }
  0x1d   :  { %181 = vmatpush.bf16.msra.mxu0 %v310_v10  ;;  %v78_v15 = vadd.f32 %v327_v7, %v77_v13 }
  0x1f   :  { %v80_v17 = vsel %vm79_vm0, %v327_v7, %v78_v15 }
  0x21   :  { %182 = vmatpush.bf16.msra.mxu0 %v309_v12 }
  0x25   :  { %183 = vmatpush.bf16.msra.mxu0 %v308_v14 }
  0x29   :  { %184 = vmatpush.bf16.msra.mxu0 %v307_v16 }
  0x2d   :  { %185 = vmatpush.bf16.msra.mxu0 %v306_v18 }
  0x85   :  { %v71_v19 = vpop.xlane.xlu0 %70 }
  0x86   :  { %v81_v20 = vmul.f32 %v80_v17, %v71_v19 }
  0x88   :  { %v83_v21 = vadd.f32 1e-06, %v81_v20 }
  0x8a   :  { %328 = vrsqrt.f32 %v83_v21  ;;  %vm91_vm2 = vweird.f32 %v83_v21 }
  0x8d   :  { %v73_v22 = vpop.xlane.xlu0 %72 }
  0x8e   :  { %v82_v23 = vmul.f32 %v80_v17, %v73_v22 }
  0x90   :  { %v329_v24 = vpop.eup %328  ;;  %v84_v25 = vadd.f32 1e-06, %v82_v23 }
  0x91   :  { %v86_v26 = vmul.f32 %v329_v24, %v83_v21  ;;  %vm92_vm1 = vweird.f32 %v329_v24 }
  0x92   :  { %330 = vrsqrt.f32 %v84_v25  ;;  %vm93_vm3 = vmor %vm91_vm2, %vm92_vm1  ;;  %vm101_vm5 = vweird.f32 %v84_v25 }
  0x93   :  { %v87_v27 = vmul.f32 %v329_v24, %v86_v26 }
  0x95   :  { %v88_v28 = vmul.f32 0.5, %v87_v27 }
  0x97   :  { %v89_v29 = vsub.f32 1.5, %v88_v28 }
  0x98   :  { %v331_v30 = vpop.eup %330 }
  0x99   :  { %v96_v31 = vmul.f32 %v331_v30, %v84_v25  ;;  %v90_v32 = vmul.f32 %v329_v24, %v89_v29  ;;  %vm102_vm4 = vweird.f32 %v331_v30 }
  0x9a   :  { %vm103_vm6 = vmor %vm101_vm5, %vm102_vm4 }
  0x9b   :  { %v97_v33 = vmul.f32 %v331_v30, %v96_v31  ;;  %v94_v36 = vsel %vm93_vm3, %v329_v24, %v90_v32 }
  0x9c   :  { %v105_v38 = vmul.f32 %v94_v36, %v516_v0 }
  0x9d   :  { %v98_v34 = vmul.f32 0.5, %v97_v33 }
  0x9e   :  { %v111_v42 = vmul.f32 %v324_v39, %v105_v38 }
  0x9f   :  { %v99_v35 = vsub.f32 1.5, %v98_v34 }
  0xa1   :  { %v100_v37 = vmul.f32 %v331_v30, %v99_v35 }
  0xa3   :  { %v104_v40 = vsel %vm103_vm6, %v331_v30, %v100_v37 }
  0xa4   :  { %v106_v41 = vmul.f32 %v104_v40, %v520_v2 }
  0xa6   :  { %v112_v43 = vmul.f32 %v324_v39, %v106_v41 }
  0xa8   :  { %v113_v44 = vpack.c.bf16 %v112_v43, %v111_v42 }
  0xaa   :  { %186 = vmatmul.bf16.vlgmr.msra.gmra.mxu0 %v113_v44 }
 0x127   :  { %v187_v45 = vpop.f32.mrf.mxu0 }
 0x128   :  { %v192_v46 = vadd.f32 %v187_v45, %v516_v0 }
 0x12a   :  { %194 = vst [vmem:[#allocation8] sm:$0xff] %v192_v46  ;;  %v196_v47 = vmul.f32 %v192_v46, %v192_v46 }
 0x12c   :  { %198 = vadd.xlane.f32.xlu1 %v196_v47 }
 0x12f   :  { %v189_v48 = vpop.f32.mrf.mxu0 }
 0x130   :  { %v193_v49 = vadd.f32 %v189_v48, %v520_v2 }
 0x132   :  { %195 = vst [vmem:[#allocation8 + $0x8] sm:$0xff] %v193_v49  ;;  %v197_v50 = vmul.f32 %v193_v49, %v193_v49 }
 0x133   :  { %248 = dma.vmem_to_hbm [thread:$0]  %s241_s13, 256, %s243_s11, [#allocation4], %s466_s28, %s466_s28, %s467_s29  }
 0x134   :  { %200 = vadd.xlane.f32.xlu1 %v197_v50 }
 0x19f   :  { %v199_v51 = vpop.xlane.xlu1 %198 }
 0x1a0   :  { %v202_v52 = vmul.f32 %v199_v51, %v80_v17 }
 0x1a2   :  { %v204_v53 = vadd.f32 1e-06, %v202_v52 }
 0x1a4   :  { %332 = vrsqrt.f32 %v204_v53  ;;  %vm212_vm8 = vweird.f32 %v204_v53 }
 0x1a7   :  { %v201_v54 = vpop.xlane.xlu1 %200 }
 0x1a8   :  { %v203_v55 = vmul.f32 %v201_v54, %v80_v17 }
 0x1aa   :  { %v333_v56 = vpop.eup %332  ;;  %v205_v57 = vadd.f32 1e-06, %v203_v55 }
 0x1ab   :  { %v207_v58 = vmul.f32 %v333_v56, %v204_v53  ;;  %vm213_vm7 = vweird.f32 %v333_v56 }
 0x1ac   :  { %334 = vrsqrt.f32 %v205_v57  ;;  %vm214_vm9 = vmor %vm212_vm8, %vm213_vm7  ;;  %vm222_vm11 = vweird.f32 %v205_v57 }
 0x1ad   :  { %v208_v59 = vmul.f32 %v333_v56, %v207_v58 }
 0x1af   :  { %v209_v60 = vmul.f32 0.5, %v208_v59 }
 0x1b1   :  { %v210_v61 = vsub.f32 1.5, %v209_v60 }
 0x1b2   :  { %v335_v62 = vpop.eup %334 }
 0x1b3   :  { %v211_v63 = vmul.f32 %v333_v56, %v210_v61  ;;  %v217_v0 = vmul.f32 %v335_v62, %v205_v57  ;;  %vm223_vm10 = vweird.f32 %v335_v62 }
 0x1b4   :  { %vm224_vm12 = vmor %vm222_vm11, %vm223_vm10 }
 0x1b5   :  { %v215_v2 = vsel %vm214_vm9, %v333_v56, %v211_v63  ;;  %v218_v3 = vmul.f32 %v335_v62, %v217_v0 }
 0x1b6   :  { %v226_v4 = vmul.f32 %v215_v2, %v192_v46 }
 0x1b7   :  { %v219_v5 = vmul.f32 0.5, %v218_v3 }
 0x1b8   :  { %v232_v6 = vmul.f32 %v325_v1, %v226_v4 }
 0x1b9   :  { %v220_v7 = vsub.f32 1.5, %v219_v5 }
 0x1ba   :  { %234 = vst [vmem:[#allocation9] sm:$0xff] %v232_v6 }
 0x1bb   :  { %v221_v8 = vmul.f32 %v335_v62, %v220_v7 }
 0x1bd   :  { %v225_v9 = vsel %vm224_vm12, %v335_v62, %v221_v8 }
 0x1be   :  { %v227_v10 = vmul.f32 %v225_v9, %v193_v49 }
 0x1c0   :  { %v233_v11 = vmul.f32 %v325_v1, %v227_v10 }
 0x1c2   :  { %235 = vst [vmem:[#allocation9 + $0x8] sm:$0xff] %v233_v11 }
 0x1c3   :  { %261 = dma.vmem_to_hbm [thread:$0]  %s254_s16, 256, %s256_s19, [#allocation10], %s466_s28, %s466_s28, %s467_s29  }
 0x1c4   :  { %460 = dma.done.wait [#allocation4], 256  }
 0x1c5   :  { %461 = vsyncadd [#allocation4], 4294967040 }
 0x1c6   :  { %462 = dma.done.wait [#allocation10], 256  }
 0x1c7   :  { %463 = vsyncadd [#allocation10], 4294967040 }
 0x1c8   :  { %270 = vsyncpa [#allocation3], 1 }
 0x1c9   :  { %271 = vsyncpa [#allocation6], 1 }
 0x1ca   :  { %272 = vsyncpa [#allocation4], 1 }
 0x1cb   :  { %273 = vsyncpa [#allocation10], 1 }

</bundles_post_ra>
